<compile_context>
chip_gen: v6e
topology: v6e:2x2x1
jax: 0.10.0
libtpu: 0.0.40
codegen_flags: <defaults>
</compile_context>

<pallas_src>
import math

import jax
import jax.numpy as jnp
from jax.experimental import pallas as pl
from jax.experimental.pallas import tpu as pltpu

TWO_PI_SQ = (2.0 * math.pi) ** 2
_TILE = 512  # lanes per grid step: multiple of 128, tiny VMEM footprint


def gaussian_mix_kernel(params_ref, x_ref, out_ref):
    """params (SMEM, f32[8]) = [A, B, C, neg_norm, mu1x, mu1y, mu2x, mu2y].

    x_ref:   (2, TILE)  row 0 = x-coordinate, row 1 = y-coordinate of points
    out_ref: (1, TILE)  f(x) per point
    """
    A = params_ref[0]
    B = params_ref[1]
    C = params_ref[2]
    neg_norm = params_ref[3]
    m1x = params_ref[4]
    m1y = params_ref[5]
    m2x = params_ref[6]
    m2y = params_ref[7]

    x0 = x_ref[0:1, :]  # (1, TILE)
    x1 = x_ref[1:2, :]  # (1, TILE)

    # Component 1: exponent = -0.5 * (x-mu1)^T S^{-1} (x-mu1), constants folded.
    d0 = x0 - m1x
    d1 = x1 - m1y
    e1 = jnp.exp(A * d0 * d0 + B * d0 * d1 + C * d1 * d1)  # EUP

    # Component 2.
    g0 = x0 - m2x
    g1 = x1 - m2y
    e2 = jnp.exp(A * g0 * g0 + B * g0 * g1 + C * g1 * g1)  # EUP

    # f = -norm*e1 + 1.5*(-norm*e2) = neg_norm * (e1 + 1.5*e2)
    out_ref[...] = neg_norm * (e1 + 1.5 * e2)


def _pack_params(mu1, mu2, sigma):
    """Hoist all sigma/mu-dependent scalars out of the kernel (computed once)."""
    mu1 = jnp.asarray(mu1, jnp.float32)
    mu2 = jnp.asarray(mu2, jnp.float32)
    s = jnp.asarray(sigma, jnp.float32)
    det = s[0, 0] * s[1, 1] - s[0, 1] * s[1, 0]
    inv_det = 1.0 / det
    # exponent(d) = A*d0^2 + B*d0*d1 + C*d1^2  ==  -0.5 * d^T S^{-1} d
    A = -0.5 * s[1, 1] * inv_det
    B = 0.5 * (s[0, 1] + s[1, 0]) * inv_det
    C = -0.5 * s[0, 0] * inv_det
    neg_norm = -jax.lax.rsqrt(TWO_PI_SQ * det)
    return jnp.stack(
        [A, B, C, neg_norm, mu1[0], mu1[1], mu2[0], mu2[1]]
    ).astype(jnp.float32)


def gaussian_mix_forward_batched(X, mu1, mu2, sigma, *, tile=_TILE):
    """Evaluate GaussianMix.forward at N points at once.

    X: (N, 2) float array of evaluation points. Returns (N,) f32.
    """
    X = jnp.asarray(X, jnp.float32).reshape(-1, 2)
    n = X.shape[0]
    n_pad = ((n + tile - 1) // tile) * tile
    # Lane-dense layout: coordinates on the sublane axis, points on lanes.
    x_t = jnp.zeros((2, n_pad), jnp.float32).at[:, :n].set(X.T)
    params = _pack_params(mu1, mu2, sigma)

    out = pl.pallas_call(
        gaussian_mix_kernel,
        out_shape=jax.ShapeDtypeStruct((1, n_pad), jnp.float32),
        grid_spec=pltpu.PrefetchScalarGridSpec(
            num_scalar_prefetch=1,  # params -> SMEM, passed to index_maps too
            grid=(n_pad // tile,),
            in_specs=[pl.BlockSpec((2, tile), lambda i, params: (0, i))],
            out_specs=pl.BlockSpec((1, tile), lambda i, params: (0, i)),
        ),
        compiler_params=pltpu.CompilerParams(
            dimension_semantics=("parallel",),  # shards tiles across TCs on v7x
        ),
    )(params, x_t)
    return out[0, :n]


def gaussian_mix_forward(x, mu1, mu2, sigma):
    """Single-point forward (0-d result), routed through the batched kernel.

    Note: for a one-off 20-FLOP scalar evaluation, plain fused XLA
    (gaussian_mix_reference) is cheaper than any kernel launch; this wrapper
    exists to keep the module's single-point API on the Pallas path.
    """
    return gaussian_mix_forward_batched(
        jnp.asarray(x, jnp.float32).reshape(1, 2), mu1, mu2, sigma
    )[0]


def gaussian_mix_reference(x, mu1, mu2, sigma):
    """Pure-JAX reference mirroring the PyTorch forward exactly."""
    x = jnp.asarray(x, jnp.float32)
    mu1 = jnp.asarray(mu1, jnp.float32)
    mu2 = jnp.asarray(mu2, jnp.float32)
    sigma = jnp.asarray(sigma, jnp.float32)
    det = jnp.linalg.det(sigma)
    inv = jnp.linalg.inv(sigma)
    c = 1.0 / jnp.sqrt(TWO_PI_SQ * det)
    d1 = x - mu1
    d2 = x - mu2
    g1 = -c * jnp.exp(-0.5 * (d1 @ inv @ d1))
    g2 = -c * jnp.exp(-0.5 * (d2 @ inv @ d2))
    return g1 + 1.5 * g2


if __name__ == "__main__":
    # Module __init__ defaults.
    mu1 = jnp.array([-0.5, -0.5], dtype=jnp.float32)
    mu2 = jnp.array([0.5, 0.5], dtype=jnp.float32)
    sigma = jnp.array([[0.3, 0.0], [0.0, 0.3]], dtype=jnp.float32)

    key = jax.random.PRNGKey(0)
    k_param, k_pts = jax.random.split(key)
    # Analogue of the module's torch.rand(2) parameter.
    x_param = jax.random.uniform(k_param, (2,), dtype=jnp.float32)
    # A batch of evaluation points (deterministic).
    pts = jax.random.normal(k_pts, (254, 2), dtype=jnp.float32)

    # Batch: row 0 = x_min (mu2, for fun_min), row 1 = the parameter x, then points.
    X = jnp.concatenate([mu2[None, :], x_param[None, :], pts], axis=0)  # (256, 2)

    f_batch = gaussian_mix_forward_batched(X, mu1, mu2, sigma)
    f_min = gaussian_mix_forward(mu2, mu1, mu2, sigma)  # single-point path
    jax.block_until_ready((f_batch, f_min))

    # Correctness against the pure-JAX reference.
    ref_batch = jax.vmap(lambda p: gaussian_mix_reference(p, mu1, mu2, sigma))(X)
    ref_min = gaussian_mix_reference(mu2, mu1, mu2, sigma)
    assert jnp.allclose(f_batch, ref_batch, rtol=1e-5, atol=1e-6), (
        jnp.max(jnp.abs(f_batch - ref_batch))
    )
    assert jnp.allclose(f_min, ref_min, rtol=1e-5, atol=1e-6), (f_min, ref_min)

    print("KERNEL_OK")
</pallas_src>

<mosaic_0001>
module attributes {stable_mosaic.version = 11 : i64} {
  func.func @gaussian_mix_kernel(%arg0: i32, %arg1: memref<8xf32, #tpu.memory_space<smem>>, %arg2: memref<2x512xf32, #tpu.memory_space<vmem>>, %arg3: memref<1x512xf32, #tpu.memory_space<vmem>>) attributes {dimension_semantics = [#tpu.dimension_semantics<parallel>], iteration_bounds = array<i64: 1>, scalar_prefetch = 1 : i64, scratch_operands = 0 : i64, tpu.core_type = #tpu.core_type<tc>, window_params = [{transform_indices = @transform_0, window_bounds = array<i64: 2, 512>}, {transform_indices = @transform_1, window_bounds = array<i64: 1, 512>}]} {
    %c0 = arith.constant 0 : index
    %0 = memref.load %arg1[%c0] : memref<8xf32, #tpu.memory_space<smem>>
    %c1 = arith.constant 1 : index
    %1 = memref.load %arg1[%c1] : memref<8xf32, #tpu.memory_space<smem>>
    %c2 = arith.constant 2 : index
    %2 = memref.load %arg1[%c2] : memref<8xf32, #tpu.memory_space<smem>>
    %c3 = arith.constant 3 : index
    %3 = memref.load %arg1[%c3] : memref<8xf32, #tpu.memory_space<smem>>
    %c4 = arith.constant 4 : index
    %4 = memref.load %arg1[%c4] : memref<8xf32, #tpu.memory_space<smem>>
    %c5 = arith.constant 5 : index
    %5 = memref.load %arg1[%c5] : memref<8xf32, #tpu.memory_space<smem>>
    %c6 = arith.constant 6 : index
    %6 = memref.load %arg1[%c6] : memref<8xf32, #tpu.memory_space<smem>>
    %c7 = arith.constant 7 : index
    %7 = memref.load %arg1[%c7] : memref<8xf32, #tpu.memory_space<smem>>
    %c0_0 = arith.constant 0 : index
    %c0_1 = arith.constant 0 : index
    %8 = vector.load %arg2[%c0_0, %c0_1] : memref<2x512xf32, #tpu.memory_space<vmem>>, vector<1x512xf32>
    %c1_2 = arith.constant 1 : index
    %c0_3 = arith.constant 0 : index
    %9 = vector.load %arg2[%c1_2, %c0_3] : memref<2x512xf32, #tpu.memory_space<vmem>>, vector<1x512xf32>
    %10 = vector.broadcast %4 : f32 to vector<1x512xf32>
    %11 = arith.subf %8, %10 : vector<1x512xf32>
    %12 = vector.broadcast %5 : f32 to vector<1x512xf32>
    %13 = arith.subf %9, %12 : vector<1x512xf32>
    %14 = vector.broadcast %0 : f32 to vector<1x512xf32>
    %15 = arith.mulf %14, %11 : vector<1x512xf32>
    %16 = arith.mulf %15, %11 : vector<1x512xf32>
    %17 = vector.broadcast %1 : f32 to vector<1x512xf32>
    %18 = arith.mulf %17, %11 : vector<1x512xf32>
    %19 = arith.mulf %18, %13 : vector<1x512xf32>
    %20 = arith.addf %16, %19 : vector<1x512xf32>
    %21 = vector.broadcast %2 : f32 to vector<1x512xf32>
    %22 = arith.mulf %21, %13 : vector<1x512xf32>
    %23 = arith.mulf %22, %13 : vector<1x512xf32>
    %24 = arith.addf %20, %23 : vector<1x512xf32>
    %25 = math.exp %24 : vector<1x512xf32>
    %26 = vector.broadcast %6 : f32 to vector<1x512xf32>
    %27 = arith.subf %8, %26 : vector<1x512xf32>
    %28 = vector.broadcast %7 : f32 to vector<1x512xf32>
    %29 = arith.subf %9, %28 : vector<1x512xf32>
    %30 = vector.broadcast %0 : f32 to vector<1x512xf32>
    %31 = arith.mulf %30, %27 : vector<1x512xf32>
    %32 = arith.mulf %31, %27 : vector<1x512xf32>
    %33 = vector.broadcast %1 : f32 to vector<1x512xf32>
    %34 = arith.mulf %33, %27 : vector<1x512xf32>
    %35 = arith.mulf %34, %29 : vector<1x512xf32>
    %36 = arith.addf %32, %35 : vector<1x512xf32>
    %37 = vector.broadcast %2 : f32 to vector<1x512xf32>
    %38 = arith.mulf %37, %29 : vector<1x512xf32>
    %39 = arith.mulf %38, %29 : vector<1x512xf32>
    %40 = arith.addf %36, %39 : vector<1x512xf32>
    %41 = math.exp %40 : vector<1x512xf32>
    %cst = arith.constant 1.500000e+00 : f32
    %42 = vector.broadcast %cst : f32 to vector<1x512xf32>
    %43 = arith.mulf %42, %41 : vector<1x512xf32>
    %44 = arith.addf %25, %43 : vector<1x512xf32>
    %45 = vector.broadcast %3 : f32 to vector<1x512xf32>
    %46 = arith.mulf %45, %44 : vector<1x512xf32>
    %c0_4 = arith.constant 0 : index
    %c0_5 = arith.constant 0 : index
    %47 = vector.load %arg3[%c0_4, %c0_5] : memref<1x512xf32, #tpu.memory_space<vmem>>, vector<1x512xf32>
    tpu.vector_store %arg3[%c0_4, %c0_5], %46 {strides = array<i32>} : memref<1x512xf32, #tpu.memory_space<vmem>>, vector<1x512xf32>,
    return
  }
  func.func @transform_0(%arg0: i32, %arg1: memref<8xf32, #tpu.memory_space<smem>>) -> (i32, i32) {
    %c0_i32 = arith.constant 0 : i32
    %c0_i32_0 = arith.constant 0 : i32
    return %c0_i32, %arg0 : i32, i32
  }
  func.func @transform_1(%arg0: i32, %arg1: memref<8xf32, #tpu.memory_space<smem>>) -> (i32, i32) {
    %c0_i32 = arith.constant 0 : i32
    %c0_i32_0 = arith.constant 0 : i32
    return %c0_i32, %arg0 : i32, i32
  }
}

</mosaic_0001>

<bundles_post_ra>
// kernel: tpu_custom_call.1
= control target key start
LH: loop header
LB: loop body
LE: loop exit
PB: predicated region body
PF: predicated region fallthrough
CT: control target
= control target key end

     0   :  { %s160_s9 = smov [#allocation3]   ;;  %s187_s0 = inlined_call_operand.hbm [shape: f32[8], index: 0, kind: input, shape index: {}]   ;;  %s188_s1 = inlined_call_operand.hbm [shape: f32[2,512], index: 1, kind: input, shape index: {}]   ;;  %s189_s2 = inlined_call_operand.hbm [shape: f32[1,512], index: 2, kind: output, shape index: {}]  }
   0x1   :  { %8 = dma.hbm_to_smem %s187_s0, 16, %s160_s9, [#allocation2] }
   0x2   :  { %154 = dma.done.wait [#allocation2], 16 }
   0x3   :  { %155 = vsyncadd [#allocation2], 4294967280 }
   0x4   :  { %10 = sfence }
   0x5   :  { %11 = vsyncpa [#allocation5], 0 }
   0x6   :  { %12 = vsyncpa [#allocation6], 0  ;;  %s161_s12 = smov [#allocation4]  }
   0x7   :  { %s19_s13 = sshll.u32 %s161_s12, 4  ;;  %s20_s13 = int_to_ptr.vmem [resolvable:$true] %s19_s13 }
   0x8   :  { %s122_s14 = scalar_lea.vmem %s20_s13, 128  ;;  %p127_p1 = scmp.lt.s32.totalorder %s20_s13, %s20_s13 }
   0x9   :  { %p123_p0 = scmp.ne.s32.totalorder %s20_s13, %s122_s14  ;;  %p128_p2 = scmp.lt.s32.totalorder %s122_s14, %s122_s14 }
   0xb   :  { %p129_p3 = por %p128_p2, %p127_p1 }
   0xd   :  { %p130_p4 = pnand %p129_p3, %p123_p0 }
   0xf   :  { %133 = shalt.err (!%p130_p4)
}
  0x10   :  { %22 = dma.hbm_to_vmem [thread:$0]  %s188_s1, 128, %s20_s13, [#allocation5]  }
  0x11   :  { %156 = dma.done.wait [#allocation5], 128  }
  0x12   :  { %157 = vsyncadd [#allocation5], 4294967168  ;;  %s26_s0 = sld [smem:[#allocation3]]  ;;  %v34_v0 = vld [vmem:[#allocation4] ss:$2 sm:$0xf]  ;;  %v72_v33 = vlaneseq }
  0x13   :  { %s92_s17 = sld [smem:[#allocation3 + $0x1]]  ;;  %v36_v2 = vld [vmem:[#allocation4 + $0x1] ss:$2 sm:$0xf]  ;;  %s162_s23 = smov [#allocation7]  }
  0x14   :  { %s93_s18 = sld [smem:[#allocation3 + $0x2]]  ;;  %s83_s24 = sshll.u32 %s162_s23, 4  ;;  %vm74_vm0 = vcmp.lt.s32.totalorder %v72_v33, 512  ;;  %s84_s24 = int_to_ptr.vmem [resolvable:$true] %s83_s24 }
  0x15   :  { %s95_s19 = sld [smem:[#allocation3 + $0x4]]  ;;  %s134_s25 = scalar_lea.vmem %s84_s24, 64 }
  0x16   :  { %s96_s20 = sld [smem:[#allocation3 + $0x5]]  ;;  %p135_p5 = scmp.ne.s32.totalorder %s84_s24, %s134_s25 }
  0x17   :  { %s97_s21 = sld [smem:[#allocation3 + $0x6]]  ;;  %p139_p6 = scmp.lt.s32.totalorder %s84_s24, %s84_s24 }
  0x18   :  { %s98_s22 = sld [smem:[#allocation3 + $0x7]]  ;;  %v41_v5 = vstv %s26_s0  ;;  %p140_p7 = scmp.lt.s32.totalorder %s134_s25, %s134_s25 }
  0x19   :  { %v44_v7 = vstv %s92_s17  ;;  %s94_s1 = sld [smem:[#allocation3 + $0x3]] }
  0x1a   :  { %v48_v8 = vstv %s93_s18  ;;  %p141_p8 = por %p140_p7, %p139_p6 }
  0x1b   :  { %v37_v1 = vstv %s95_s19 }
  0x1c   :  { %v38_v3 = vsub.f32 %v34_v0, %v37_v1  ;;  %v39_v4 = vstv %s96_s20  ;;  %p142_p9 = pnand %p141_p8, %p135_p5 }
  0x1d   :  { %v40_v6 = vsub.f32 %v36_v2, %v39_v4  ;;  %v54_v9 = vstv %s97_s21 }
  0x1e   :  { %v42_v10 = vmul.f32 %v41_v5, %v38_v3  ;;  %v45_v11 = vmul.f32 %v44_v7, %v38_v3  ;;  %v55_v12 = vsub.f32 %v34_v0, %v54_v9  ;;  %v56_v13 = vstv %s98_s22 }
  0x1f   :  { %v49_v14 = vmul.f32 %v48_v8, %v40_v6  ;;  %v57_v15 = vsub.f32 %v36_v2, %v56_v13  ;;  %v70_v35 = vstv %s94_s1 }
  0x20   :  { %v43_v16 = vmul.f32 %v42_v10, %v38_v3  ;;  %v46_v17 = vmul.f32 %v45_v11, %v40_v6  ;;  %v58_v18 = vmul.f32 %v55_v12, %v41_v5  ;;  %v60_v19 = vmul.f32 %v55_v12, %v44_v7 }
  0x21   :  { %v50_v20 = vmul.f32 %v49_v14, %v40_v6  ;;  %v63_v21 = vmul.f32 %v57_v15, %v48_v8 }
  0x22   :  { %v47_v22 = vadd.f32 %v46_v17, %v43_v16  ;;  %v59_v23 = vmul.f32 %v58_v18, %v55_v12  ;;  %v61_v24 = vmul.f32 %v60_v19, %v57_v15 }
  0x23   :  { %v64_v25 = vmul.f32 %v63_v21, %v57_v15 }
  0x24   :  { %v51_v26 = vadd.f32 %v50_v20, %v47_v22  ;;  %v62_v27 = vadd.f32 %v61_v24, %v59_v23 }
  0x26   :  { %v52_v28 = vmul.f32 1.442695, %v51_v26  ;;  %v65_v29 = vadd.f32 %v64_v25, %v62_v27 }
  0x28   :  { %v66_v30 = vmul.f32 1.442695, %v65_v29  ;;  %102 = vpow2.f32 %v52_v28 }
  0x2a   :  { %104 = vpow2.f32 %v66_v30 }
  0x35   :  { %v103_v31 = vpop.eup %102 }
  0x37   :  { %v105_v32 = vpop.eup %104 }
  0x38   :  { %v68_v34 = vmul.f32 1.5, %v105_v32 }
  0x3a   :  { %v69_v36 = vadd.f32 %v103_v31, %v68_v34 }
  0x3c   :  { %v71_v37 = vmul.f32 %v70_v35, %v69_v36 }
  0x3e   :  { %76 = vst.msk [vmem:[#allocation7] sm:$0xf] %vm74_vm0, %v71_v37 }
  0x3f   :  { %145 = shalt.err (!%p142_p9)
}
  0x40   :  { %86 = dma.vmem_to_hbm [thread:$0]  %s84_s24, 64, %s189_s2, [#allocation6]  }
  0x41   :  { %158 = dma.done.wait [#allocation6], 64  }
  0x42   :  { %159 = vsyncadd [#allocation6], 4294967232 }
  0x43   :  { %90 = vsyncpa [#allocation5], 1 }
  0x44   :  { %91 = vsyncpa [#allocation6], 1 }

</bundles_post_ra>
